<compile_context>
chip_gen: v7x
topology: tpu7x:2x2x1
jax: 0.10.0
libtpu: 0.0.40
codegen_flags: <defaults>
</compile_context>

<pallas_src>
import jax
import jax.numpy as jnp
from jax.experimental import pallas as pl
from jax.experimental.pallas import tpu as pltpu

FEAT_DIM = 512
ENCODE_LENGTH = 64
ENCODE_PAD = 128          # lane-dense output width (>=128 -> unmasked stores)
K_TILE = 2048             # contraction tile when K is large (multi-step case)
MAX_SINGLE_K = 4096       # K at or below this runs as a single grid step


def _k_tiling(in_dim):
    """Return (padded K, contraction tile) for the backbone matmul."""
    if in_dim <= MAX_SINGLE_K:
        k_pad = max(pl.cdiv(in_dim, 128) * 128, 128)
        return k_pad, k_pad                       # one grid step
    k_pad = pl.cdiv(in_dim, K_TILE) * K_TILE
    return k_pad, K_TILE                          # K_TILE-wide loop


# ----------------------------------------------------------------------------
# Fused kernel: K-tiled backbone matmul + bias/ReLU + fc_encode + hash layer.
# ----------------------------------------------------------------------------
def fused_kernel(x_ref, w1_ref, b1_ref, w2_ref, b2_ref,
                 feat_ref, h_ref, code_ref, acc_ref):
    k = pl.program_id(0)

    @pl.when(k == 0)
    def _init():
        acc_ref[...] = jnp.zeros_like(acc_ref)

    # Frozen-backbone stub: bf16 x bf16 -> f32 accumulation on the MXU.
    acc_ref[...] += jnp.dot(x_ref[...], w1_ref[...],
                            preferred_element_type=jnp.float32)

    @pl.when(k == pl.num_programs(0) - 1)
    def _finalize():
        # Backbone epilogue: bias + ReLU (rides free VPU slots).
        feat = jnp.maximum(acc_ref[...] + b1_ref[...], 0.0)
        feat_ref[...] = feat.astype(feat_ref.dtype)

        # fc_encode: Linear(512, 64); weights lane-padded to 128 columns.
        h = jnp.dot(feat.astype(jnp.bfloat16), w2_ref[...],
                    preferred_element_type=jnp.float32) + b2_ref[...]
        h_ref[...] = h.astype(h_ref.dtype)

        # hash_layer: per-column descending sort; top N/2 rows -> +1, rest -1.
        # rank[i, j] = #{ k : h[k,j] > h[i,j]  or  (h[k,j] == h[i,j] and k<i) }
        # (index tie-break == deterministic descending sort).  Vectorized
        # 3-D compare + reduce; N is tiny compared to the matmuls.
        n, d = h.shape
        half = n // 2
        hk = jnp.broadcast_to(h[:, None, :], (n, n, d))    # candidate rows k
        hi = jnp.broadcast_to(h[None, :, :], (n, n, d))    # query rows i
        k_idx = jax.lax.broadcasted_iota(jnp.int32, (n, n, d), 0)
        i_idx = jax.lax.broadcasted_iota(jnp.int32, (n, n, d), 1)
        beats = (hk > hi) | ((hk == hi) & (k_idx < i_idx))
        rank = jnp.sum(beats.astype(jnp.int32), axis=0)    # [n, d]
        code_ref[...] = jnp.where(rank < half,
                                  jnp.float32(1.0),
                                  jnp.float32(-1.0)).astype(code_ref.dtype)


# ----------------------------------------------------------------------------
# Wrapper
# ----------------------------------------------------------------------------
def renet34_forward(x_nchw, params):
    """Returns (features, h, b) just like ReNet34.forward."""
    n = x_nchw.shape[0]
    x_flat = x_nchw.reshape(n, -1).astype(jnp.float32)
    in_dim = x_flat.shape[1]

    k_pad, tk = _k_tiling(in_dim)
    w1 = params["w1"]                    # [k_pad, 512] bf16, pre-padded rows
    assert w1.shape[0] == k_pad, "params were built for a different input size"

    if k_pad > in_dim:
        x_flat = jnp.pad(x_flat, ((0, 0), (0, k_pad - in_dim)))
    x_bf16 = x_flat.astype(jnp.bfloat16)

    k_steps = k_pad // tk

    grid_spec = pltpu.PrefetchScalarGridSpec(
        num_scalar_prefetch=0,
        grid=(k_steps,),
        in_specs=[
            pl.BlockSpec((n, tk), lambda k: (0, k)),                 # x tile
            pl.BlockSpec((tk, FEAT_DIM), lambda k: (k, 0)),          # w1 tile
            pl.BlockSpec((1, FEAT_DIM), lambda k: (0, 0)),           # b1
            pl.BlockSpec((FEAT_DIM, ENCODE_PAD), lambda k: (0, 0)),  # w2
            pl.BlockSpec((1, ENCODE_PAD), lambda k: (0, 0)),         # b2
        ],
        out_specs=[
            pl.BlockSpec((n, FEAT_DIM), lambda k: (0, 0)),           # feat
            pl.BlockSpec((n, ENCODE_PAD), lambda k: (0, 0)),         # h (pad)
            pl.BlockSpec((n, ENCODE_PAD), lambda k: (0, 0)),         # b (pad)
        ],
        scratch_shapes=[pltpu.VMEM((n, FEAT_DIM), jnp.float32)],     # f32 acc
    )

    feat, h_pad, code_pad = pl.pallas_call(
        fused_kernel,
        grid_spec=grid_spec,
        out_shape=(
            jax.ShapeDtypeStruct((n, FEAT_DIM), jnp.float32),
            jax.ShapeDtypeStruct((n, ENCODE_PAD), jnp.float32),
            jax.ShapeDtypeStruct((n, ENCODE_PAD), jnp.float32),
        ),
        compiler_params=pltpu.CompilerParams(
            # K is a reduction axis (accumulator resident across it).
            dimension_semantics=("arbitrary",),
            # Conservative scoped-VMEM limit; double-buffered bf16 w1 tiles of
            # (K_TILE, 512) plus outputs fit easily on v5e/v6e/v7x.
            vmem_limit_bytes=32 * 1024 * 1024,
        ),
    )(x_bf16, w1, params["b1"], params["w2"], params["b2"])

    return feat, h_pad[:, :ENCODE_LENGTH], code_pad[:, :ENCODE_LENGTH]


# ----------------------------------------------------------------------------
# Deterministic parameter construction (frozen weights pre-cast / pre-padded)
# ----------------------------------------------------------------------------
def init_params(in_dim):
    k1, k2, k3, k4 = jax.random.split(jax.random.PRNGKey(0), 4)
    k_pad, _ = _k_tiling(in_dim)

    # frozen "resnet" stand-in, rows zero-padded to the kernel's padded K
    w1 = jax.random.normal(k1, (in_dim, FEAT_DIM), jnp.float32) * 0.02
    w1 = jnp.pad(w1, ((0, k_pad - in_dim), (0, 0)))
    b1 = jax.random.normal(k2, (1, FEAT_DIM), jnp.float32) * 0.02

    # fc_encode: Linear(512, encode_length), columns zero-padded to 128 lanes
    w2 = (jax.random.normal(k3, (FEAT_DIM, ENCODE_LENGTH), jnp.float32)
          * (1.0 / jnp.sqrt(FEAT_DIM)))
    w2 = jnp.pad(w2, ((0, 0), (0, ENCODE_PAD - ENCODE_LENGTH)))
    b2 = jax.random.normal(k4, (1, ENCODE_LENGTH), jnp.float32) * 0.01
    b2 = jnp.pad(b2, ((0, 0), (0, ENCODE_PAD - ENCODE_LENGTH)))

    return {
        "w1": w1.astype(jnp.bfloat16),
        "b1": b1,
        "w2": w2.astype(jnp.bfloat16),
        "b2": b2,
    }


# ----------------------------------------------------------------------------
# Main
# ----------------------------------------------------------------------------
if __name__ == "__main__":
    N, C, H, W = 8, 3, 16, 16  # small NCHW batch; N even so N/2 codes are +1
    key = jax.random.PRNGKey(0)
    x = jax.random.normal(key, (N, C, H, W), jnp.float32)

    params = init_params(C * H * W)
    feat, h, b = renet34_forward(x, params)
    jax.block_until_ready((feat, h, b))

    # sanity: codes are +/-1 and each column has exactly N/2 (+1) and N/2 (-1)
    col_sums = jnp.sum(b, axis=0)
    assert bool(jnp.all(col_sums == 0.0)), "hash layer balance check failed"
    assert bool(jnp.all(jnp.abs(b) == 1.0)), "hash layer sign check failed"
    assert feat.shape == (N, FEAT_DIM)
    assert h.shape == (N, ENCODE_LENGTH)
    assert b.shape == (N, ENCODE_LENGTH)

    print("KERNEL_OK")
</pallas_src>

<mosaic_0001>
module attributes {stable_mosaic.version = 11 : i64} {
  func.func @fused_kernel(%arg0: i32, %arg1: memref<8x768xbf16, #tpu.memory_space<vmem>>, %arg2: memref<768x512xbf16, #tpu.memory_space<vmem>>, %arg3: memref<1x512xf32, #tpu.memory_space<vmem>>, %arg4: memref<512x128xbf16, #tpu.memory_space<vmem>>, %arg5: memref<1x128xf32, #tpu.memory_space<vmem>>, %arg6: memref<8x512xf32, #tpu.memory_space<vmem>>, %arg7: memref<8x128xf32, #tpu.memory_space<vmem>>, %arg8: memref<8x128xf32, #tpu.memory_space<vmem>>, %arg9: memref<8x512xf32, #tpu.memory_space<vmem>>) attributes {dimension_semantics = [#tpu.dimension_semantics<arbitrary>], iteration_bounds = array<i64: 1>, scalar_prefetch = 0 : i64, scratch_operands = 1 : i64, tpu.core_type = #tpu.core_type<tc>, window_params = [{transform_indices = @transform_0, window_bounds = array<i64: 8, 768>}, {transform_indices = @transform_1, window_bounds = array<i64: 768, 512>}, {pipeline_mode = #tpu.pipeline_mode<synchronous>, transform_indices = @transform_2, window_bounds = array<i64: 1, 512>}, {pipeline_mode = #tpu.pipeline_mode<synchronous>, transform_indices = @transform_3, window_bounds = array<i64: 512, 128>}, {pipeline_mode = #tpu.pipeline_mode<synchronous>, transform_indices = @transform_4, window_bounds = array<i64: 1, 128>}, {pipeline_mode = #tpu.pipeline_mode<synchronous>, transform_indices = @transform_5, window_bounds = array<i64: 8, 512>}, {pipeline_mode = #tpu.pipeline_mode<synchronous>, transform_indices = @transform_6, window_bounds = array<i64: 8, 128>}, {pipeline_mode = #tpu.pipeline_mode<synchronous>, transform_indices = @transform_7, window_bounds = array<i64: 8, 128>}]} {
    %c0_i32 = arith.constant 0 : i32
    %0 = arith.cmpi eq, %arg0, %c0_i32 : i32
    %1 = arith.extui %0 : i1 to i32
    %c0_i32_0 = arith.constant 0 : i32
    %2 = arith.cmpi ne, %1, %c0_i32_0 : i32
    scf.if %2 {
      %cst_10 = arith.constant 0.000000e+00 : f32
      %12 = vector.broadcast %cst_10 : f32 to vector<8x512xf32>
      %c0_11 = arith.constant 0 : index
      %c0_12 = arith.constant 0 : index
      %13 = vector.load %arg9[%c0_11, %c0_12] : memref<8x512xf32, #tpu.memory_space<vmem>>, vector<8x512xf32>
      tpu.vector_store %arg9[%c0_11, %c0_12], %12 {strides = array<i32>} : memref<8x512xf32, #tpu.memory_space<vmem>>, vector<8x512xf32>,
    } else {
    }
    %c0 = arith.constant 0 : index
    %c0_1 = arith.constant 0 : index
    %3 = vector.load %arg9[%c0, %c0_1] : memref<8x512xf32, #tpu.memory_space<vmem>>, vector<8x512xf32>
    %c0_2 = arith.constant 0 : index
    %c0_3 = arith.constant 0 : index
    %4 = vector.load %arg1[%c0_2, %c0_3] : memref<8x768xbf16, #tpu.memory_space<vmem>>, vector<8x768xbf16>
    %c0_4 = arith.constant 0 : index
    %c0_5 = arith.constant 0 : index
    %5 = vector.load %arg2[%c0_4, %c0_5] : memref<768x512xbf16, #tpu.memory_space<vmem>>, vector<768x512xbf16>
    %cst = arith.constant dense<0.000000e+00> : vector<8x512xf32>
    %6 = tpu.matmul %4, %5, %cst {dimension_numbers = #tpu.dot_dimension_numbers<[1], [0], [0], [1], [0, 0, 1, 1], [], []>} : vector<8x768xbf16>, vector<768x512xbf16>, vector<8x512xf32> -> vector<8x512xf32>
    %7 = arith.addf %3, %6 : vector<8x512xf32>
    %c0_6 = arith.constant 0 : index
    %c0_7 = arith.constant 0 : index
    %8 = vector.load %arg9[%c0_6, %c0_7] : memref<8x512xf32, #tpu.memory_space<vmem>>, vector<8x512xf32>
    tpu.vector_store %arg9[%c0_6, %c0_7], %7 {strides = array<i32>} : memref<8x512xf32, #tpu.memory_space<vmem>>, vector<8x512xf32>,
    %c0_i32_8 = arith.constant 0 : i32
    %9 = arith.cmpi eq, %arg0, %c0_i32_8 : i32
    %10 = arith.extui %9 : i1 to i32
    %c0_i32_9 = arith.constant 0 : i32
    %11 = arith.cmpi ne, %10, %c0_i32_9 : i32
    scf.if %11 {
      %c0_10 = arith.constant 0 : index
      %c0_11 = arith.constant 0 : index
      %12 = vector.load %arg9[%c0_10, %c0_11] : memref<8x512xf32, #tpu.memory_space<vmem>>, vector<8x512xf32>
      %c0_12 = arith.constant 0 : index
      %c0_13 = arith.constant 0 : index
      %13 = vector.load %arg3[%c0_12, %c0_13] : memref<1x512xf32, #tpu.memory_space<vmem>>, vector<1x512xf32>
      %14 = vector.broadcast %13 : vector<1x512xf32> to vector<8x512xf32>
      %15 = arith.addf %12, %14 : vector<8x512xf32>
      %cst_14 = arith.constant 0.000000e+00 : f32
      %16 = vector.broadcast %cst_14 : f32 to vector<8x512xf32>
      %17 = arith.maximumf %15, %16 : vector<8x512xf32>
      %c0_15 = arith.constant 0 : index
      %c0_16 = arith.constant 0 : index
      %18 = vector.load %arg6[%c0_15, %c0_16] : memref<8x512xf32, #tpu.memory_space<vmem>>, vector<8x512xf32>
      tpu.vector_store %arg6[%c0_15, %c0_16], %17 {strides = array<i32>} : memref<8x512xf32, #tpu.memory_space<vmem>>, vector<8x512xf32>,
      %19 = arith.truncf %17 : vector<8x512xf32> to vector<8x512xbf16>
      %c0_17 = arith.constant 0 : index
      %c0_18 = arith.constant 0 : index
      %20 = vector.load %arg4[%c0_17, %c0_18] : memref<512x128xbf16, #tpu.memory_space<vmem>>, vector<512x128xbf16>
      %cst_19 = arith.constant dense<0.000000e+00> : vector<8x128xf32>
      %21 = tpu.matmul %19, %20, %cst_19 {dimension_numbers = #tpu.dot_dimension_numbers<[1], [0], [0], [1], [0, 0, 1, 1], [], []>} : vector<8x512xbf16>, vector<512x128xbf16>, vector<8x128xf32> -> vector<8x128xf32>
      %c0_20 = arith.constant 0 : index
      %c0_21 = arith.constant 0 : index
      %22 = vector.load %arg5[%c0_20, %c0_21] : memref<1x128xf32, #tpu.memory_space<vmem>>, vector<1x128xf32>
      %23 = vector.broadcast %22 : vector<1x128xf32> to vector<8x128xf32>
      %24 = arith.addf %21, %23 : vector<8x128xf32>
      %c0_22 = arith.constant 0 : index
      %c0_23 = arith.constant 0 : index
      %25 = vector.load %arg7[%c0_22, %c0_23] : memref<8x128xf32, #tpu.memory_space<vmem>>, vector<8x128xf32>
      tpu.vector_store %arg7[%c0_22, %c0_23], %24 {strides = array<i32>} : memref<8x128xf32, #tpu.memory_space<vmem>>, vector<8x128xf32>,
      %26 = vector.shape_cast %24 : vector<8x128xf32> to vector<8x1x128xf32>
      %27 = vector.shape_cast %26 : vector<8x1x128xf32> to vector<8x1x128xf32>
      %28 = vector.broadcast %27 : vector<8x1x128xf32> to vector<8x8x128xf32>
      %29 = vector.shape_cast %24 : vector<8x128xf32> to vector<1x8x128xf32>
      %30 = vector.shape_cast %29 : vector<1x8x128xf32> to vector<1x8x128xf32>
      %31 = vector.broadcast %30 : vector<1x8x128xf32> to vector<8x8x128xf32>
      %32 = tpu.iota {dimensions = array<i32: 0>} : vector<8x8x128xi32>
      %33 = tpu.iota {dimensions = array<i32: 1>} : vector<8x8x128xi32>
      %34 = arith.cmpf ogt, %28, %31 : vector<8x8x128xf32>
      %35 = arith.cmpf oeq, %28, %31 : vector<8x8x128xf32>
      %36 = arith.cmpi slt, %32, %33 : vector<8x8x128xi32>
      %37 = arith.andi %35, %36 : vector<8x8x128xi1>
      %38 = arith.ori %34, %37 : vector<8x8x128xi1>
      %39 = arith.extui %38 : vector<8x8x128xi1> to vector<8x8x128xi32>
      %cst_24 = arith.constant dense<0> : vector<8x128xi32>
      %40 = vector.multi_reduction <add>, %39, %cst_24 [0] : vector<8x8x128xi32> to vector<8x128xi32>
      %c4_i32 = arith.constant 4 : i32
      %41 = vector.broadcast %c4_i32 : i32 to vector<8x128xi32>
      %42 = arith.cmpi slt, %40, %41 : vector<8x128xi32>
      %cst_25 = arith.constant 1.000000e+00 : f32
      %cst_26 = arith.constant -1.000000e+00 : f32
      %43 = vector.broadcast %cst_25 : f32 to vector<8x128xf32>
      %44 = vector.broadcast %cst_26 : f32 to vector<8x128xf32>
      %45 = arith.select %42, %43, %44 : vector<8x128xi1>, vector<8x128xf32>
      %c0_27 = arith.constant 0 : index
      %c0_28 = arith.constant 0 : index
      %46 = vector.load %arg8[%c0_27, %c0_28] : memref<8x128xf32, #tpu.memory_space<vmem>>, vector<8x128xf32>
      tpu.vector_store %arg8[%c0_27, %c0_28], %45 {strides = array<i32>} : memref<8x128xf32, #tpu.memory_space<vmem>>, vector<8x128xf32>,
    } else {
    }
    return
  }
  func.func @transform_0(%arg0: i32) -> (i32, i32) {
    %c0_i32 = arith.constant 0 : i32
    %c0_i32_0 = arith.constant 0 : i32
    return %c0_i32, %arg0 : i32, i32
  }
  func.func @transform_1(%arg0: i32) -> (i32, i32) {
    %c0_i32 = arith.constant 0 : i32
    %c0_i32_0 = arith.constant 0 : i32
    return %arg0, %c0_i32 : i32, i32
  }
  func.func @transform_2(%arg0: i32) -> (i32, i32) {
    %c0_i32 = arith.constant 0 : i32
    %c0_i32_0 = arith.constant 0 : i32
    %c0_i32_1 = arith.constant 0 : i32
    return %c0_i32, %c0_i32_0 : i32, i32
  }
  func.func @transform_3(%arg0: i32) -> (i32, i32) {
    %c0_i32 = arith.constant 0 : i32
    %c0_i32_0 = arith.constant 0 : i32
    %c0_i32_1 = arith.constant 0 : i32
    return %c0_i32, %c0_i32_0 : i32, i32
  }
  func.func @transform_4(%arg0: i32) -> (i32, i32) {
    %c0_i32 = arith.constant 0 : i32
    %c0_i32_0 = arith.constant 0 : i32
    %c0_i32_1 = arith.constant 0 : i32
    return %c0_i32, %c0_i32_0 : i32, i32
  }
  func.func @transform_5(%arg0: i32) -> (i32, i32) {
    %c0_i32 = arith.constant 0 : i32
    %c0_i32_0 = arith.constant 0 : i32
    %c0_i32_1 = arith.constant 0 : i32
    return %c0_i32, %c0_i32_0 : i32, i32
  }
  func.func @transform_6(%arg0: i32) -> (i32, i32) {
    %c0_i32 = arith.constant 0 : i32
    %c0_i32_0 = arith.constant 0 : i32
    %c0_i32_1 = arith.constant 0 : i32
    return %c0_i32, %c0_i32_0 : i32, i32
  }
  func.func @transform_7(%arg0: i32) -> (i32, i32) {
    %c0_i32 = arith.constant 0 : i32
    %c0_i32_0 = arith.constant 0 : i32
    %c0_i32_1 = arith.constant 0 : i32
    return %c0_i32, %c0_i32_0 : i32, i32
  }
}

</mosaic_0001>

<bundles_post_ra>
// kernel: tpu_custom_call.1
= control target key start
LH: loop header
LB: loop body
LE: loop exit
PB: predicated region body
PF: predicated region fallthrough
CT: control target
= control target key end

     0   :  { %13 = vsyncpa [#allocation4], 0  ;;  %s3066_s0 = inlined_call_operand.hbm [shape: bf16[8,768], index: 0, kind: input, shape index: {}]   ;;  %s3067_s1 = inlined_call_operand.hbm [shape: bf16[768,512], index: 1, kind: input, shape index: {}]   ;;  %s3068_s2 = inlined_call_operand.vmem [shape: f32[1,512], index: 2, kind: input, shape index: {}]   ;;  %s3069_s3 = inlined_call_operand.hbm [shape: bf16[512,128], index: 3, kind: input, shape index: {}]   ;;  %s3070_s4 = inlined_call_operand.vmem [shape: f32[1,128], index: 4, kind: input, shape index: {}]   ;;  %s3071_s5 = inlined_call_operand.hbm [shape: f32[8,512], index: 5, kind: output, shape index: {0}]   ;;  %s3072_s6 = inlined_call_operand.hbm [shape: f32[8,128], index: 6, kind: output, shape index: {1}]   ;;  %s3073_s7 = inlined_call_operand.hbm [shape: f32[8,128], index: 7, kind: output, shape index: {2}]  }
   0x1   :  { %14 = vsyncpa [#allocation7], 0 }
   0x2   :  { %15 = vsyncpa [#allocation5], 0 }
   0x3   :  { %16 = vsyncpa [#allocation11], 0  ;;  %s2843_s24 = smov [#allocation6]   ;;  %s2703_s28 = scalar_lea.hbm %s3067_s1, 24576 }
   0x4   :  { %s32_s25 = sshll.u32 %s2843_s24, 4  ;;  %p2704_p0 = scmp.ne.s32.totalorder %s3067_s1, %s2703_s28  ;;  %s33_s25 = int_to_ptr.vmem [resolvable:$true] %s32_s25 }
   0x5   :  { %p2707_p1 = scmp.lt.u32.totalorder %s2703_s28, %s3067_s1 }
   0x7   :  { %p2709_p2 = pnand %p2707_p1, %p2704_p0 }
   0x9   :  { %2712 = shalt.err (!%p2709_p2)
}
   0xa   :  { %s2713_s10 = scalar_lea.vmem %s33_s25, 24576  ;;  %p2718_p4 = scmp.lt.s32.totalorder %s33_s25, %s33_s25 }
   0xb   :  { %p2714_p3 = scmp.ne.s32.totalorder %s33_s25, %s2713_s10  ;;  %p2719_p5 = scmp.lt.s32.totalorder %s2713_s10, %s2713_s10 }
   0xd   :  { %p2720_p6 = por %p2719_p5, %p2718_p4 }
   0xf   :  { %p2721_p7 = pnand %p2720_p6, %p2714_p3 }
  0x11   :  { %2724 = shalt.err (!%p2721_p7)
}
  0x12   :  { %s2844_s11 = smov 256   ;;  %s2845_s12 = smov 16  }
  0x13   :  { %38 = dma.hbm_to_vmem [thread:$0]  %s3067_s1, 24576, %s33_s25, [#allocation7], %s2844_s11, %s2844_s11, %s2845_s12  }
  0x14   :  { %s2846_s15 = smov [#allocation3]   ;;  %s2847_s17 = smov [#allocation8]  }
  0x15   :  { %s23_s16 = sshll.u32 %s2846_s15, 4  ;;  %s46_s18 = sshll.u32 %s2847_s17, 4  ;;  %s24_s16 = int_to_ptr.vmem [resolvable:$true] %s23_s16  ;;  %s47_s18 = int_to_ptr.vmem [resolvable:$true] %s46_s18 }
  0x16   :  { %s2725_s21 = scalar_lea.hbm %s3066_s0, 384 }
  0x17   :  { %p2726_p8 = scmp.ne.s32.totalorder %s3066_s0, %s2725_s21  ;;  %p2729_p9 = scmp.lt.u32.totalorder %s2725_s21, %s3066_s0 }
  0x19   :  { %p2731_p10 = pnand %p2729_p9, %p2726_p8 }
  0x1b   :  { %2734 = shalt.err (!%p2731_p10)
}
  0x1c   :  { %s2735_s1 = scalar_lea.vmem %s24_s16, 384  ;;  %p2740_p12 = scmp.lt.s32.totalorder %s24_s16, %s24_s16 }
  0x1d   :  { %p2736_p11 = scmp.ne.s32.totalorder %s24_s16, %s2735_s1  ;;  %p2741_p13 = scmp.lt.s32.totalorder %s2735_s1, %s2735_s1 }
  0x1f   :  { %p2742_p0 = por %p2741_p13, %p2740_p12 }
  0x21   :  { %p2743_p1 = pnand %p2742_p0, %p2736_p11 }
  0x23   :  { %2746 = shalt.err (!%p2743_p1)
}
  0x24   :  { %26 = dma.hbm_to_vmem [thread:$0]  %s3066_s0, 384, %s24_s16, [#allocation4]  }
  0x25   :  { %s2747_s30 = scalar_lea.hbm %s3069_s3, 4096 }
  0x26   :  { %p2748_p2 = scmp.ne.s32.totalorder %s3069_s3, %s2747_s30  ;;  %p2751_p3 = scmp.lt.u32.totalorder %s2747_s30, %s3069_s3 }
  0x28   :  { %p2753_p4 = pnand %p2751_p3, %p2748_p2 }
  0x2a   :  { %2756 = shalt.err (!%p2753_p4)
}
  0x2b   :  { %s2757_s12 = scalar_lea.vmem %s47_s18, 4096  ;;  %p2762_p6 = scmp.lt.s32.totalorder %s47_s18, %s47_s18 }
  0x2c   :  { %p2758_p5 = scmp.ne.s32.totalorder %s47_s18, %s2757_s12  ;;  %p2763_p7 = scmp.lt.s32.totalorder %s2757_s12, %s2757_s12 }
  0x2e   :  { %p2764_p8 = por %p2763_p7, %p2762_p6 }
  0x30   :  { %p2765_p9 = pnand %p2764_p8, %p2758_p5 }
  0x32   :  { %2768 = shalt.err (!%p2765_p9)
}
  0x33   :  { %s2848_s0 = smov 64   ;;  %s2849_s13 = smov 4  }
  0x34   :  { %52 = dma.hbm_to_vmem [thread:$0]  %s3069_s3, 4096, %s47_s18, [#allocation7], %s2848_s0, %s2848_s0, %s2849_s13  }
  0x35   :  { %2835 = dma.done.wait [#allocation4], 384  }
  0x36   :  { %2836 = vsyncadd [#allocation4], 4294966912 }
  0x37   :  { %2837 = dma.done.wait [#allocation7], 28672  }
  0x38   :  { %2838 = vsyncadd [#allocation7], 4294938624  ;;  %v2377_v0 = vld [vmem:[#allocation6 + $0x4] ss:$16 sps:$4 sm:$0xff]   ;;  %v2381_v2 = vld [vmem:[#allocation6] ss:$16 sps:$4 sm:$0xff]  }
  0x39   :  { %v2379_v1 = vld [vmem:[#allocation6 + $0x204] ss:$16 sps:$4 sm:$0xff]   ;;  %1253 = vmatprep.subr.bf16.mxu0 %v2377_v0  ;;  %v2382_v3 = vld [vmem:[#allocation6 + $0x200] ss:$16 sps:$4 sm:$0xff]   ;;  %v77_v46 = vld [vmem:[#allocation3] sm:$0xff] }
  0x3a   :  { %1294 = vmatprep.subr.bf16.mxu1 %v2379_v1  ;;  %v2383_v4 = vld [vmem:[#allocation6 + $0x24] ss:$16 sps:$4 sm:$0xff]   ;;  %1254 = vmatpush1.bf16.msra.mxu0 %v2381_v2  ;;  %v2387_v6 = vld [vmem:[#allocation6 + $0x20] ss:$16 sps:$4 sm:$0xff]   ;;  %v2932_v47 = vcombine.high %v77_v46, %v77_v46 }
  0x3b   :  { %1295 = vmatpush1.bf16.msra.mxu1 %v2382_v3  ;;  %v2385_v5 = vld [vmem:[#allocation6 + $0x224] ss:$16 sps:$4 sm:$0xff]   ;;  %1255 = vmatprep.subr.bf16.mxu0 %v2383_v4  ;;  %v2388_v7 = vld [vmem:[#allocation6 + $0x220] ss:$16 sps:$4 sm:$0xff]  }
  0x3c   :  { %1296 = vmatprep.subr.bf16.mxu1 %v2385_v5  ;;  %v2389_v8 = vld [vmem:[#allocation6 + $0x44] ss:$16 sps:$4 sm:$0xff]   ;;  %v2393_v10 = vld [vmem:[#allocation6 + $0x40] ss:$16 sps:$4 sm:$0xff]   ;;  %1285 = vmatprep.mubr.bf16.mxu0 %v2932_v47  ;;  %v2482_v5 = vld [vmem:[#allocation6 + $0xc] ss:$16 sps:$4 sm:$0xff]  }
  0x3d   :  { %v2391_v9 = vld [vmem:[#allocation6 + $0x244] ss:$16 sps:$4 sm:$0xff]   ;;  %v2394_v11 = vld [vmem:[#allocation6 + $0x240] ss:$16 sps:$4 sm:$0xff]  }
  0x3e   :  { %1256 = vmatpush1.bf16.msra.mxu0 %v2387_v6  ;;  %v2395_v12 = vld [vmem:[#allocation6 + $0x64] ss:$16 sps:$4 sm:$0xff]   ;;  %v2399_v14 = vld [vmem:[#allocation6 + $0x60] ss:$16 sps:$4 sm:$0xff]   ;;  %v2938_v6 = vcombine.low %v77_v46, %v77_v46 }
  0x3f   :  { %1297 = vmatpush1.bf16.msra.mxu1 %v2388_v7  ;;  %1257 = vmatprep.subr.bf16.mxu0 %v2389_v8  ;;  %v2397_v13 = vld [vmem:[#allocation6 + $0x264] ss:$16 sps:$4 sm:$0xff]   ;;  %v2400_v15 = vld [vmem:[#allocation6 + $0x260] ss:$16 sps:$4 sm:$0xff]  }
  0x40   :  { %1298 = vmatprep.subr.bf16.mxu1 %v2391_v9  ;;  %v2401_v16 = vld [vmem:[#allocation6 + $0x84] ss:$16 sps:$4 sm:$0xff]   ;;  %v2405_v18 = vld [vmem:[#allocation6 + $0x80] ss:$16 sps:$4 sm:$0xff]   ;;  %v2480_v9 = vld [vmem:[#allocation6 + $0x8] ss:$16 sps:$4 sm:$0xff]  }
  0x41   :  { %v2403_v17 = vld [vmem:[#allocation6 + $0x284] ss:$16 sps:$4 sm:$0xff]   ;;  %v2406_v19 = vld [vmem:[#allocation6 + $0x280] ss:$16 sps:$4 sm:$0xff]  }
  0x42   :  { %1258 = vmatpush1.bf16.msra.mxu0 %v2393_v10  ;;  %v2407_v20 = vld [vmem:[#allocation6 + $0xa4] ss:$16 sps:$4 sm:$0xff]   ;;  %v2411_v22 = vld [vmem:[#allocation6 + $0xa0] ss:$16 sps:$4 sm:$0xff]  }
  0x43   :  { %1299 = vmatpush1.bf16.msra.mxu1 %v2394_v11  ;;  %1259 = vmatprep.subr.bf16.mxu0 %v2395_v12  ;;  %v2409_v21 = vld [vmem:[#allocation6 + $0x2a4] ss:$16 sps:$4 sm:$0xff]   ;;  %v2412_v23 = vld [vmem:[#allocation6 + $0x2a0] ss:$16 sps:$4 sm:$0xff]   ;;  %v2488_v11 = vld [vmem:[#allocation6 + $0x2c] ss:$16 sps:$4 sm:$0xff]  }
  0x44   :  { %1300 = vmatprep.subr.bf16.mxu1 %v2397_v13  ;;  %v2413_v24 = vld [vmem:[#allocation6 + $0xc4] ss:$16 sps:$4 sm:$0xff]   ;;  %v2417_v26 = vld [vmem:[#allocation6 + $0xc0] ss:$16 sps:$4 sm:$0xff]   ;;  %v2486_v13 = vld [vmem:[#allocation6 + $0x28] ss:$16 sps:$4 sm:$0xff]  }
  0x45   :  { %v2415_v25 = vld [vmem:[#allocation6 + $0x2c4] ss:$16 sps:$4 sm:$0xff]   ;;  %v2418_v27 = vld [vmem:[#allocation6 + $0x2c0] ss:$16 sps:$4 sm:$0xff]  }
  0x46   :  { %1260 = vmatpush1.bf16.msra.mxu0 %v2399_v14  ;;  %v2419_v28 = vld [vmem:[#allocation6 + $0xe4] ss:$16 sps:$4 sm:$0xff]   ;;  %v2423_v30 = vld [vmem:[#allocation6 + $0xe0] ss:$16 sps:$4 sm:$0xff]  }
  0x47   :  { %1301 = vmatpush1.bf16.msra.mxu1 %v2400_v15  ;;  %1261 = vmatprep.subr.bf16.mxu0 %v2401_v16  ;;  %v2421_v29 = vld [vmem:[#allocation6 + $0x2e4] ss:$16 sps:$4 sm:$0xff]   ;;  %v2424_v31 = vld [vmem:[#allocation6 + $0x2e0] ss:$16 sps:$4 sm:$0xff]   ;;  %v2494_v15 = vld [vmem:[#allocation6 + $0x4c] ss:$16 sps:$4 sm:$0xff]  }
  0x48   :  { %1302 = vmatprep.subr.bf16.mxu1 %v2403_v17  ;;  %v2425_v32 = vld [vmem:[#allocation6 + $0x104] ss:$16 sps:$4 sm:$0xff]   ;;  %v2429_v34 = vld [vmem:[#allocation6 + $0x100] ss:$16 sps:$4 sm:$0xff]   ;;  %v2492_v17 = vld [vmem:[#allocation6 + $0x48] ss:$16 sps:$4 sm:$0xff]  }
  0x49   :  { %v2427_v33 = vld [vmem:[#allocation6 + $0x304] ss:$16 sps:$4 sm:$0xff]   ;;  %v2430_v35 = vld [vmem:[#allocation6 + $0x300] ss:$16 sps:$4 sm:$0xff]  }
  0x4a   :  { %1262 = vmatpush1.bf16.msra.mxu0 %v2405_v18  ;;  %v2431_v36 = vld [vmem:[#allocation6 + $0x124] ss:$16 sps:$4 sm:$0xff]   ;;  %v2435_v38 = vld [vmem:[#allocation6 + $0x120] ss:$16 sps:$4 sm:$0xff]  }
  0x4b   :  { %1303 = vmatpush1.bf16.msra.mxu1 %v2406_v19  ;;  %1263 = vmatprep.subr.bf16.mxu0 %v2407_v20  ;;  %v2433_v37 = vld [vmem:[#allocation6 + $0x324] ss:$16 sps:$4 sm:$0xff]   ;;  %v2436_v39 = vld [vmem:[#allocation6 + $0x320] ss:$16 sps:$4 sm:$0xff]   ;;  %v2500_v19 = vld [vmem:[#allocation6 + $0x6c] ss:$16 sps:$4 sm:$0xff]  }
  0x4c   :  { %1304 = vmatprep.subr.bf16.mxu1 %v2409_v21  ;;  %v2437_v40 = vld [vmem:[#allocation6 + $0x144] ss:$16 sps:$4 sm:$0xff]   ;;  %v2441_v42 = vld [vmem:[#allocation6 + $0x140] ss:$16 sps:$4 sm:$0xff]   ;;  %v2498_v21 = vld [vmem:[#allocation6 + $0x68] ss:$16 sps:$4 sm:$0xff]  }
  0x4d   :  { %v2439_v41 = vld [vmem:[#allocation6 + $0x344] ss:$16 sps:$4 sm:$0xff]   ;;  %v2442_v43 = vld [vmem:[#allocation6 + $0x340] ss:$16 sps:$4 sm:$0xff]  }
  0x4e   :  { %1264 = vmatpush1.bf16.msra.mxu0 %v2411_v22  ;;  %v2443_v44 = vld [vmem:[#allocation6 + $0x164] ss:$16 sps:$4 sm:$0xff]   ;;  %v2447_v49 = vld [vmem:[#allocation6 + $0x160] ss:$16 sps:$4 sm:$0xff]  }
  0x4f   :  { %1305 = vmatpush1.bf16.msra.mxu1 %v2412_v23  ;;  %1265 = vmatprep.subr.bf16.mxu0 %v2413_v24  ;;  %v2445_v45 = vld [vmem:[#allocation6 + $0x364] ss:$16 sps:$4 sm:$0xff]   ;;  %v2448_v50 = vld [vmem:[#allocation6 + $0x360] ss:$16 sps:$4 sm:$0xff]   ;;  %v2506_v23 = vld [vmem:[#allocation6 + $0x8c] ss:$16 sps:$4 sm:$0xff]  }
  0x50   :  { %1306 = vmatprep.subr.bf16.mxu1 %v2415_v25  ;;  %v78_v48 = vld [vmem:[#allocation3 + $0x8] sm:$0xff]  ;;  %v2504_v25 = vld [vmem:[#allocation6 + $0x88] ss:$16 sps:$4 sm:$0xff]  }
  0x51   :  { %v2934_v51 = vcombine.high %v78_v48, %v78_v48  ;;  %v2449_v52 = vld [vmem:[#allocation6 + $0x184] ss:$16 sps:$4 sm:$0xff]   ;;  %v2453_v54 = vld [vmem:[#allocation6 + $0x180] ss:$16 sps:$4 sm:$0xff]   ;;  %v2940_v7 = vcombine.low %v78_v48, %v78_v48 }
  0x52   :  { %1266 = vmatpush1.bf16.msra.mxu0 %v2417_v26  ;;  %v2451_v53 = vld [vmem:[#allocation6 + $0x384] ss:$16 sps:$4 sm:$0xff]   ;;  %v2454_v55 = vld [vmem:[#allocation6 + $0x380] ss:$16 sps:$4 sm:$0xff]  }
  0x53   :  { %1307 = vmatpush1.bf16.msra.mxu1 %v2418_v27  ;;  %1267 = vmatprep.subr.bf16.mxu0 %v2419_v28  ;;  %v2455_v56 = vld [vmem:[#allocation6 + $0x1a4] ss:$16 sps:$4 sm:$0xff]   ;;  %v2459_v58 = vld [vmem:[#allocation6 + $0x1a0] ss:$16 sps:$4 sm:$0xff]   ;;  %v2512_v27 = vld [vmem:[#allocation6 + $0xac] ss:$16 sps:$4 sm:$0xff]  }
  0x54   :  { %1308 = vmatprep.subr.bf16.mxu1 %v2421_v29  ;;  %1326 = vmatprep.mubr.bf16.mxu1 %v2934_v51  ;;  %v2457_v57 = vld [vmem:[#allocation6 + $0x3a4] ss:$16 sps:$4 sm:$0xff]   ;;  %v2460_v59 = vld [vmem:[#allocation6 + $0x3a0] ss:$16 sps:$4 sm:$0xff]   ;;  %v2510_v29 = vld [vmem:[#allocation6 + $0xa8] ss:$16 sps:$4 sm:$0xff]  }
  0x55   :  { %v2461_v60 = vld [vmem:[#allocation6 + $0x1c4] ss:$16 sps:$4 sm:$0xff]   ;;  %v2465_v62 = vld [vmem:[#allocation6 + $0x1c0] ss:$16 sps:$4 sm:$0xff]  }
  0x56   :  { %1268 = vmatpush1.bf16.msra.mxu0 %v2423_v30  ;;  %v2463_v61 = vld [vmem:[#allocation6 + $0x3c4] ss:$16 sps:$4 sm:$0xff]   ;;  %v2466_v63 = vld [vmem:[#allocation6 + $0x3c0] ss:$16 sps:$4 sm:$0xff]  }
  0x57   :  { %1309 = vmatpush1.bf16.msra.mxu1 %v2424_v31  ;;  %1269 = vmatprep.subr.bf16.mxu0 %v2425_v32  ;;  %v2467_v0 = vld [vmem:[#allocation6 + $0x1e4] ss:$16 sps:$4 sm:$0xff]   ;;  %v2471_v2 = vld [vmem:[#allocation6 + $0x1e0] ss:$16 sps:$4 sm:$0xff]   ;;  %v2518_v31 = vld [vmem:[#allocation6 + $0xcc] ss:$16 sps:$4 sm:$0xff]  }
  0x58   :  { %1310 = vmatprep.subr.bf16.mxu1 %v2427_v33  ;;  %v2469_v1 = vld [vmem:[#allocation6 + $0x3e4] ss:$16 sps:$4 sm:$0xff]   ;;  %v2472_v3 = vld [vmem:[#allocation6 + $0x3e0] ss:$16 sps:$4 sm:$0xff]   ;;  %v2945_v32 = vld [vmem:[#allocation3 + $0x10] sm:$0xff] }
  0x59   :  { %v2479_v4 = vld [vmem:[#allocation6 + $0x404] ss:$16 sps:$4 sm:$0xff]   ;;  %v2477_v8 = vld [vmem:[#allocation6 + $0x400] ss:$16 sps:$4 sm:$0xff]  }
  0x5a   :  { %1270 = vmatpush1.bf16.msra.mxu0 %v2429_v34  ;;  %v2485_v10 = vld [vmem:[#allocation6 + $0x424] ss:$16 sps:$4 sm:$0xff]   ;;  %v2483_v12 = vld [vmem:[#allocation6 + $0x420] ss:$16 sps:$4 sm:$0xff]   ;;  %v2949_v34 = vcombine.high %v2945_v32, %v2945_v32 }
  0x5b   :  { %1311 = vmatpush1.bf16.msra.mxu1 %v2430_v35  ;;  %1271 = vmatprep.subr.bf16.mxu0 %v2431_v36  ;;  %v2491_v14 = vld [vmem:[#allocation6 + $0x444] ss:$16 sps:$4 sm:$0xff]   ;;  %v2489_v16 = vld [vmem:[#allocation6 + $0x440] ss:$16 sps:$4 sm:$0xff]   ;;  %v2516_v35 = vld [vmem:[#allocation6 + $0xc8] ss:$16 sps:$4 sm:$0xff]  }
  0x5c   :  { %1312 = vmatprep.subr.bf16.mxu1 %v2433_v37  ;;  %v2497_v18 = vld [vmem:[#allocation6 + $0x464] ss:$16 sps:$4 sm:$0xff]   ;;  %v2495_v20 = vld [vmem:[#allocation6 + $0x460] ss:$16 sps:$4 sm:$0xff]   ;;  %v2524_v37 = vld [vmem:[#allocation6 + $0xec] ss:$16 sps:$4 sm:$0xff]  }
  0x5d   :  { %v2503_v22 = vld [vmem:[#allocation6 + $0x484] ss:$16 sps:$4 sm:$0xff]   ;;  %v2501_v24 = vld [vmem:[#allocation6 + $0x480] ss:$16 sps:$4 sm:$0xff]  }
  0x5e   :  { %1272 = vmatpush1.bf16.msra.mxu0 %v2435_v38  ;;  %v2509_v26 = vld [vmem:[#allocation6 + $0x4a4] ss:$16 sps:$4 sm:$0xff]   ;;  %v2507_v28 = vld [vmem:[#allocation6 + $0x4a0] ss:$16 sps:$4 sm:$0xff]  }
  0x5f   :  { %1313 = vmatpush1.bf16.msra.mxu1 %v2436_v39  ;;  %1273 = vmatprep.subr.bf16.mxu0 %v2437_v40  ;;  %v2515_v30 = vld [vmem:[#allocation6 + $0x4c4] ss:$16 sps:$4 sm:$0xff]   ;;  %v2513_v33 = vld [vmem:[#allocation6 + $0x4c0] ss:$16 sps:$4 sm:$0xff]   ;;  %v2522_v39 = vld [vmem:[#allocation6 + $0xe8] ss:$16 sps:$4 sm:$0xff]  }
  0x60   :  { %1314 = vmatprep.subr.bf16.mxu1 %v2439_v41  ;;  %v2521_v36 = vld [vmem:[#allocation6 + $0x4e4] ss:$16 sps:$4 sm:$0xff]   ;;  %v2519_v38 = vld [vmem:[#allocation6 + $0x4e0] ss:$16 sps:$4 sm:$0xff]   ;;  %v2530_v41 = vld [vmem:[#allocation6 + $0x10c] ss:$16 sps:$4 sm:$0xff]  }
  0x61   :  { %v2527_v40 = vld [vmem:[#allocation6 + $0x504] ss:$16 sps:$4 sm:$0xff]   ;;  %v2531_v46 = vld [vmem:[#allocation6 + $0x520] ss:$16 sps:$4 sm:$0xff]  }
  0x62   :  { %1274 = vmatpush1.bf16.msra.mxu0 %v2441_v42  ;;  %v2525_v42 = vld [vmem:[#allocation6 + $0x500] ss:$16 sps:$4 sm:$0xff]   ;;  %v2539_v48 = vld [vmem:[#allocation6 + $0x544] ss:$16 sps:$4 sm:$0xff]  }
  0x63   :  { %1315 = vmatpush1.bf16.msra.mxu1 %v2442_v43  ;;  %1275 = vmatprep.subr.bf16.mxu0 %v2443_v44  ;;  %v2528_v43 = vld [vmem:[#allocation6 + $0x108] ss:$16 sps:$4 sm:$0xff]   ;;  %v2533_v44 = vld [vmem:[#allocation6 + $0x524] ss:$16 sps:$4 sm:$0xff]  }
  0x64   :  { %1316 = vmatprep.subr.bf16.mxu1 %v2445_v45  ;;  %v2536_v45 = vld [vmem:[#allocation6 + $0x12c] ss:$16 sps:$4 sm:$0xff]  }
  0x66   :  { %1276 = vmatpush1.bf16.msra.mxu0 %v2447_v49  ;;  %v2542_v49 = vld [vmem:[#allocation6 + $0x14c] ss:$16 sps:$4 sm:$0xff]  }
  0x67   :  { %1317 = vmatpush1.bf16.msra.mxu1 %v2448_v50  ;;  %1277 = vmatprep.subr.bf16.mxu0 %v2449_v52  ;;  %v2537_v50 = vld [vmem:[#allocation6 + $0x540] ss:$16 sps:$4 sm:$0xff]   ;;  %v2540_v52 = vld [vmem:[#allocation6 + $0x148] ss:$16 sps:$4 sm:$0xff]  }
  0x68   :  { %1318 = vmatprep.subr.bf16.mxu1 %v2451_v53  ;;  %v2545_v53 = vld [vmem:[#allocation6 + $0x564] ss:$16 sps:$4 sm:$0xff]  }
  0x6a   :  { %1278 = vmatpush1.bf16.msra.mxu0 %v2453_v54  ;;  %v2548_v54 = vld [vmem:[#allocation6 + $0x16c] ss:$16 sps:$4 sm:$0xff]  }
  0x6b   :  { %1319 = vmatpush1.bf16.msra.mxu1 %v2454_v55  ;;  %1279 = vmatprep.subr.bf16.mxu0 %v2455_v56  ;;  %v2543_v55 = vld [vmem:[#allocation6 + $0x560] ss:$16 sps:$4 sm:$0xff]   ;;  %v2546_v56 = vld [vmem:[#allocation6 + $0x168] ss:$16 sps:$4 sm:$0xff]  }
  0x6c   :  { %1320 = vmatprep.subr.bf16.mxu1 %v2457_v57  ;;  %v2551_v57 = vld [vmem:[#allocation6 + $0x584] ss:$16 sps:$4 sm:$0xff]  }
  0x6e   :  { %1280 = vmatpush1.bf16.msra.mxu0 %v2459_v58  ;;  %v2554_v58 = vld [vmem:[#allocation6 + $0x18c] ss:$16 sps:$4 sm:$0xff]  }
  0x6f   :  { %1321 = vmatpush1.bf16.msra.mxu1 %v2460_v59  ;;  %1281 = vmatprep.subr.bf16.mxu0 %v2461_v60  ;;  %v2549_v59 = vld [vmem:[#allocation6 + $0x580] ss:$16 sps:$4 sm:$0xff]   ;;  %v2552_v60 = vld [vmem:[#allocation6 + $0x188] ss:$16 sps:$4 sm:$0xff]  }
  0x70   :  { %1322 = vmatprep.subr.bf16.mxu1 %v2463_v61  ;;  %v2557_v61 = vld [vmem:[#allocation6 + $0x5a4] ss:$16 sps:$4 sm:$0xff]  }
  0x72   :  { %1282 = vmatpush1.bf16.msra.mxu0 %v2465_v62  ;;  %v2560_v62 = vld [vmem:[#allocation6 + $0x1ac] ss:$16 sps:$4 sm:$0xff]  }
  0x73   :  { %1323 = vmatpush1.bf16.msra.mxu1 %v2466_v63  ;;  %1283 = vmatprep.subr.bf16.mxu0 %v2467_v0  ;;  %v2555_v63 = vld [vmem:[#allocation6 + $0x5a0] ss:$16 sps:$4 sm:$0xff]   ;;  %v2558_v0 = vld [vmem:[#allocation6 + $0x1a8] ss:$16 sps:$4 sm:$0xff]  }
  0x74   :  { %1324 = vmatprep.subr.bf16.mxu1 %v2469_v1  ;;  %v2563_v1 = vld [vmem:[#allocation6 + $0x5c4] ss:$16 sps:$4 sm:$0xff]  }
  0x76   :  { %1284 = vmatpush1.bf16.msra.mxu0 %v2471_v2  ;;  %v2566_v2 = vld [vmem:[#allocation6 + $0x1cc] ss:$16 sps:$4 sm:$0xff]  }
  0x77   :  { %1325 = vmatpush1.bf16.msra.mxu1 %v2472_v3  ;;  %1335 = vmatprep.subr.bf16.mxu0 %v2479_v4  ;;  %v2561_v3 = vld [vmem:[#allocation6 + $0x5c0] ss:$16 sps:$4 sm:$0xff]   ;;  %v2564_v4 = vld [vmem:[#allocation6 + $0x1c8] ss:$16 sps:$4 sm:$0xff]  }
  0x78   :  { %1376 = vmatprep.subr.bf16.mxu1 %v2482_v5  ;;  %v2569_v5 = vld [vmem:[#allocation6 + $0x5e4] ss:$16 sps:$4 sm:$0xff]  }
  0x79   :  { %1286 = vmatmul.mubr.bf16.vlgmr.msra.gmra.mrb[0].mxu0 %v2938_v6 }
  0x7a   :  { %1327 = vmatmul.mubr.bf16.vlgmr.msra.gmra.mrb[0].mxu1 %v2940_v7  ;;  %1336 = vmatpush1.bf16.msra.mxu0 %v2477_v8  ;;  %v2572_v8 = vld [vmem:[#allocation6 + $0x1ec] ss:$16 sps:$4 sm:$0xff]  }
  0x7b   :  { %1377 = vmatpush1.bf16.msra.mxu1 %v2480_v9  ;;  %1337 = vmatprep.subr.bf16.mxu0 %v2485_v10  ;;  %v2567_v9 = vld [vmem:[#allocation6 + $0x5e0] ss:$16 sps:$4 sm:$0xff]   ;;  %v2570_v10 = vld [vmem:[#allocation6 + $0x1e8] ss:$16 sps:$4 sm:$0xff]  }
  0x7c   :  { %1378 = vmatprep.subr.bf16.mxu1 %v2488_v11  ;;  %1408 = vmatprep.mubr.bf16.mxu1 %v2932_v47  ;;  %v2534_v47 = vld [vmem:[#allocation6 + $0x128] ss:$16 sps:$4 sm:$0xff]   ;;  %v2577_v11 = vld [vmem:[#allocation6 + $0x20c] ss:$16 sps:$4 sm:$0xff]  }
  0x7d   :  { %1367 = vmatprep.mubr.bf16.mxu0 %v2949_v34 }
  0x7e   :  { %1338 = vmatpush1.bf16.msra.mxu0 %v2483_v12  ;;  %v2580_v12 = vld [vmem:[#allocation6 + $0x40c] ss:$16 sps:$4 sm:$0xff]  }
  0x7f   :  { %1379 = vmatpush1.bf16.msra.mxu1 %v2486_v13  ;;  %1339 = vmatprep.subr.bf16.mxu0 %v2491_v14  ;;  %v2954_v13 = vcombine.low %v2945_v32, %v2945_v32  ;;  %v2575_v14 = vld [vmem:[#allocation6 + $0x208] ss:$16 sps:$4 sm:$0xff]  }
  0x80   :  { %1380 = vmatprep.subr.bf16.mxu1 %v2494_v15  ;;  %v2578_v15 = vld [vmem:[#allocation6 + $0x408] ss:$16 sps:$4 sm:$0xff]  }
  0x81   :  { %v2605_v32 = vld [vmem:[#allocation6 + $0x2a8] ss:$16 sps:$4 sm:$0xff]  }
  0x82   :  { %1340 = vmatpush1.bf16.msra.mxu0 %v2489_v16  ;;  %v2583_v16 = vld [vmem:[#allocation6 + $0x22c] ss:$16 sps:$4 sm:$0xff]  }
  0x83   :  { %1381 = vmatpush1.bf16.msra.mxu1 %v2492_v17  ;;  %1341 = vmatprep.subr.bf16.mxu0 %v2497_v18  ;;  %v2586_v17 = vld [vmem:[#allocation6 + $0x42c] ss:$16 sps:$4 sm:$0xff]   ;;  %v2581_v18 = vld [vmem:[#allocation6 + $0x228] ss:$16 sps:$4 sm:$0xff]  }
  0x84   :  { %1382 = vmatprep.subr.bf16.mxu1 %v2500_v19  ;;  %v2584_v19 = vld [vmem:[#allocation6 + $0x428] ss:$16 sps:$4 sm:$0xff]  }
  0x86   :  { %1342 = vmatpush1.bf16.msra.mxu0 %v2495_v20  ;;  %v2589_v20 = vld [vmem:[#allocation6 + $0x24c] ss:$16 sps:$4 sm:$0xff]  }
  0x87   :  { %1383 = vmatpush1.bf16.msra.mxu1 %v2498_v21  ;;  %1343 = vmatprep.subr.bf16.mxu0 %v2503_v22  ;;  %v2592_v21 = vld [vmem:[#allocation6 + $0x44c] ss:$16 sps:$4 sm:$0xff]   ;;  %v2587_v22 = vld [vmem:[#allocation6 + $0x248] ss:$16 sps:$4 sm:$0xff]  }
  0x88   :  { %1384 = vmatprep.subr.bf16.mxu1 %v2506_v23  ;;  %v2590_v23 = vld [vmem:[#allocation6 + $0x448] ss:$16 sps:$4 sm:$0xff]  }
  0x8a   :  { %1344 = vmatpush1.bf16.msra.mxu0 %v2501_v24  ;;  %v2595_v24 = vld [vmem:[#allocation6 + $0x26c] ss:$16 sps:$4 sm:$0xff]  }
  0x8b   :  { %1385 = vmatpush1.bf16.msra.mxu1 %v2504_v25  ;;  %1345 = vmatprep.subr.bf16.mxu0 %v2509_v26  ;;  %v2598_v25 = vld [vmem:[#allocation6 + $0x46c] ss:$16 sps:$4 sm:$0xff]   ;;  %v2593_v26 = vld [vmem:[#allocation6 + $0x268] ss:$16 sps:$4 sm:$0xff]  }
  0x8c   :  { %1386 = vmatprep.subr.bf16.mxu1 %v2512_v27  ;;  %v2601_v27 = vld [vmem:[#allocation6 + $0x28c] ss:$16 sps:$4 sm:$0xff]  }
  0x8e   :  { %1346 = vmatpush1.bf16.msra.mxu0 %v2507_v28  ;;  %v2604_v28 = vld [vmem:[#allocation6 + $0x48c] ss:$16 sps:$4 sm:$0xff]  }
  0x8f   :  { %1387 = vmatpush1.bf16.msra.mxu1 %v2510_v29  ;;  %1347 = vmatprep.subr.bf16.mxu0 %v2515_v30  ;;  %v2599_v29 = vld [vmem:[#allocation6 + $0x288] ss:$16 sps:$4 sm:$0xff]  }
  0x90   :  { %1388 = vmatprep.subr.bf16.mxu1 %v2518_v31  ;;  %v2602_v30 = vld [vmem:[#allocation6 + $0x488] ss:$16 sps:$4 sm:$0xff]   ;;  %v2607_v31 = vld [vmem:[#allocation6 + $0x2ac] ss:$16 sps:$4 sm:$0xff]  }
  0x92   :  { %1348 = vmatpush1.bf16.msra.mxu0 %v2513_v33  ;;  %v2608_v33 = vld [vmem:[#allocation6 + $0x4a8] ss:$16 sps:$4 sm:$0xff]  }
  0x93   :  { %1389 = vmatpush1.bf16.msra.mxu1 %v2516_v35  ;;  %1349 = vmatprep.subr.bf16.mxu0 %v2521_v36  ;;  %v2616_v35 = vld [vmem:[#allocation6 + $0x4cc] ss:$16 sps:$4 sm:$0xff]   ;;  %v2611_v36 = vld [vmem:[#allocation6 + $0x2c8] ss:$16 sps:$4 sm:$0xff]  }
  0x94   :  { %1390 = vmatprep.subr.bf16.mxu1 %v2524_v37  ;;  %v2614_v37 = vld [vmem:[#allocation6 + $0x4c8] ss:$16 sps:$4 sm:$0xff]  }
  0x96   :  { %1350 = vmatpush1.bf16.msra.mxu0 %v2519_v38  ;;  %v2619_v38 = vld [vmem:[#allocation6 + $0x2ec] ss:$16 sps:$4 sm:$0xff]  }
  0x97   :  { %1391 = vmatpush1.bf16.msra.mxu1 %v2522_v39  ;;  %1351 = vmatprep.subr.bf16.mxu0 %v2527_v40  ;;  %v2622_v39 = vld [vmem:[#allocation6 + $0x4ec] ss:$16 sps:$4 sm:$0xff]   ;;  %v2617_v40 = vld [vmem:[#allocation6 + $0x2e8] ss:$16 sps:$4 sm:$0xff]  }
  0x98   :  { %1392 = vmatprep.subr.bf16.mxu1 %v2530_v41  ;;  %v2620_v41 = vld [vmem:[#allocation6 + $0x4e8] ss:$16 sps:$4 sm:$0xff]  }
  0x9a   :  { %1352 = vmatpush1.bf16.msra.mxu0 %v2525_v42  ;;  %v2625_v42 = vld [vmem:[#allocation6 + $0x30c] ss:$16 sps:$4 sm:$0xff]  }
  0x9b   :  { %1393 = vmatpush1.bf16.msra.mxu1 %v2528_v43  ;;  %1353 = vmatprep.subr.bf16.mxu0 %v2533_v44  ;;  %v2628_v43 = vld [vmem:[#allocation6 + $0x50c] ss:$16 sps:$4 sm:$0xff]   ;;  %v2623_v44 = vld [vmem:[#allocation6 + $0x308] ss:$16 sps:$4 sm:$0xff]  }
  0x9c   :  { %1394 = vmatprep.subr.bf16.mxu1 %v2536_v45  ;;  %v2626_v45 = vld [vmem:[#allocation6 + $0x508] ss:$16 sps:$4 sm:$0xff]  }
  0x9e   :  { %1354 = vmatpush1.bf16.msra.mxu0 %v2531_v46  ;;  %v2631_v46 = vld [vmem:[#allocation6 + $0x32c] ss:$16 sps:$4 sm:$0xff]  }
  0x9f   :  { %1395 = vmatpush1.bf16.msra.mxu1 %v2534_v47  ;;  %1355 = vmatprep.subr.bf16.mxu0 %v2539_v48  ;;  %v2634_v47 = vld [vmem:[#allocation6 + $0x52c] ss:$16 sps:$4 sm:$0xff]   ;;  %v2629_v48 = vld [vmem:[#allocation6 + $0x328] ss:$16 sps:$4 sm:$0xff]  }
  0xa0   :  { %1396 = vmatprep.subr.bf16.mxu1 %v2542_v49  ;;  %v2632_v49 = vld [vmem:[#allocation6 + $0x528] ss:$16 sps:$4 sm:$0xff]  }
  0xa2   :  { %1356 = vmatpush1.bf16.msra.mxu0 %v2537_v50  ;;  %v2637_v50 = vld [vmem:[#allocation6 + $0x34c] ss:$16 sps:$4 sm:$0xff]  }
  0xa3   :  { %1397 = vmatpush1.bf16.msra.mxu1 %v2540_v52  ;;  %1357 = vmatprep.subr.bf16.mxu0 %v2545_v53  ;;  %v2640_v52 = vld [vmem:[#allocation6 + $0x54c] ss:$16 sps:$4 sm:$0xff]   ;;  %v2635_v53 = vld [vmem:[#allocation6 + $0x348] ss:$16 sps:$4 sm:$0xff]  }
  0xa4   :  { %1398 = vmatprep.subr.bf16.mxu1 %v2548_v54  ;;  %v2638_v54 = vld [vmem:[#allocation6 + $0x548] ss:$16 sps:$4 sm:$0xff]  }
  0xa6   :  { %1358 = vmatpush1.bf16.msra.mxu0 %v2543_v55  ;;  %v2643_v55 = vld [vmem:[#allocation6 + $0x36c] ss:$16 sps:$4 sm:$0xff]  }
  0xa7   :  { %1399 = vmatpush1.bf16.msra.mxu1 %v2546_v56  ;;  %1359 = vmatprep.subr.bf16.mxu0 %v2551_v57  ;;  %v2646_v56 = vld [vmem:[#allocation6 + $0x56c] ss:$16 sps:$4 sm:$0xff]   ;;  %v2641_v57 = vld [vmem:[#allocation6 + $0x368] ss:$16 sps:$4 sm:$0xff]  }
  0xa8   :  { %1400 = vmatprep.subr.bf16.mxu1 %v2554_v58  ;;  %v2644_v58 = vld [vmem:[#allocation6 + $0x568] ss:$16 sps:$4 sm:$0xff]  }
  0xaa   :  { %1360 = vmatpush1.bf16.msra.mxu0 %v2549_v59  ;;  %v2649_v59 = vld [vmem:[#allocation6 + $0x38c] ss:$16 sps:$4 sm:$0xff]  }
  0xab   :  { %1401 = vmatpush1.bf16.msra.mxu1 %v2552_v60  ;;  %1361 = vmatprep.subr.bf16.mxu0 %v2557_v61  ;;  %v2652_v60 = vld [vmem:[#allocation6 + $0x58c] ss:$16 sps:$4 sm:$0xff]   ;;  %v2647_v61 = vld [vmem:[#allocation6 + $0x388] ss:$16 sps:$4 sm:$0xff]  }
  0xac   :  { %1402 = vmatprep.subr.bf16.mxu1 %v2560_v62  ;;  %v2650_v62 = vld [vmem:[#allocation6 + $0x588] ss:$16 sps:$4 sm:$0xff]  }
  0xae   :  { %1362 = vmatpush1.bf16.msra.mxu0 %v2555_v63  ;;  %v2655_v63 = vld [vmem:[#allocation6 + $0x3ac] ss:$16 sps:$4 sm:$0xff]  }
  0xaf   :  { %1403 = vmatpush1.bf16.msra.mxu1 %v2558_v0  ;;  %1363 = vmatprep.subr.bf16.mxu0 %v2563_v1  ;;  %v2658_v0 = vld [vmem:[#allocation6 + $0x5ac] ss:$16 sps:$4 sm:$0xff]   ;;  %v2653_v1 = vld [vmem:[#allocation6 + $0x3a8] ss:$16 sps:$4 sm:$0xff]  }
  0xb0   :  { %1404 = vmatprep.subr.bf16.mxu1 %v2566_v2  ;;  %v2656_v2 = vld [vmem:[#allocation6 + $0x5a8] ss:$16 sps:$4 sm:$0xff]  }
  0xb2   :  { %1364 = vmatpush1.bf16.msra.mxu0 %v2561_v3  ;;  %v2661_v3 = vld [vmem:[#allocation6 + $0x3cc] ss:$16 sps:$4 sm:$0xff]  }
  0xb3   :  { %1405 = vmatpush1.bf16.msra.mxu1 %v2564_v4  ;;  %1365 = vmatprep.subr.bf16.mxu0 %v2569_v5  ;;  %v2664_v4 = vld [vmem:[#allocation6 + $0x5cc] ss:$16 sps:$4 sm:$0xff]   ;;  %v2659_v5 = vld [vmem:[#allocation6 + $0x3c8] ss:$16 sps:$4 sm:$0xff]  }
  0xb4   :  { %1406 = vmatprep.subr.bf16.mxu1 %v2572_v8  ;;  %v2662_v8 = vld [vmem:[#allocation6 + $0x5c8] ss:$16 sps:$4 sm:$0xff]  }
  0xb6   :  { %1366 = vmatpush1.bf16.msra.mxu0 %v2567_v9  ;;  %v2667_v9 = vld [vmem:[#allocation6 + $0x3ec] ss:$16 sps:$4 sm:$0xff]  }
  0xb7   :  { %1407 = vmatpush1.bf16.msra.mxu1 %v2570_v10  ;;  %1417 = vmatprep.subr.bf16.mxu0 %v2577_v11  ;;  %v2670_v10 = vld [vmem:[#allocation6 + $0x5ec] ss:$16 sps:$4 sm:$0xff]   ;;  %v2665_v11 = vld [vmem:[#allocation6 + $0x3e8] ss:$16 sps:$4 sm:$0xff]  }
  0xb8   :  { %1458 = vmatprep.subr.bf16.mxu1 %v2580_v12  ;;  %v2668_v12 = vld [vmem:[#allocation6 + $0x5e8] ss:$16 sps:$4 sm:$0xff]  }
  0xb9   :  { %1368 = vmatmul.mubr.bf16.vlgmr.msra.gmra.mrb[4].mxu0 %v2954_v13 }
  0xba   :  { %1409 = vmatmul.mubr.bf16.vlgmr.msra.gmra.mrb[4].mxu1 %v2938_v6  ;;  %1418 = vmatpush1.bf16.msra.mxu0 %v2575_v14  ;;  %v2596_v6 = vld [vmem:[#allocation6 + $0x468] ss:$16 sps:$4 sm:$0xff]   ;;  %v2671_v14 = vld [vmem:[#allocation8 + $0x40] sm:$0xff]  }
  0xbb   :  { %1459 = vmatpush1.bf16.msra.mxu1 %v2578_v15  ;;  %1419 = vmatprep.subr.bf16.mxu0 %v2583_v16  ;;  %v2672_v15 = vld [vmem:[#allocation8] sm:$0xff]   ;;  %v2673_v16 = vld [vmem:[#allocation8 + $0x48] sm:$0xff]  }
  0xbc   :  { %1460 = vmatprep.subr.bf16.mxu1 %v2586_v17  ;;  %1449 = vmatprep.mubr.bf16.mxu0 %v2934_v51  ;;  %v2610_v51 = vld [vmem:[#allocation6 + $0x4ac] ss:$16 sps:$4 sm:$0xff]  }
  0xbd   :  { %1490 = vmatprep.mubr.bf16.mxu1 %v2949_v34  ;;  %v2613_v34 = vld [vmem:[#allocation6 + $0x2cc] ss:$16 sps:$4 sm:$0xff]  }
  0xbe   :  { %1420 = vmatpush1.bf16.msra.mxu0 %v2581_v18  ;;  %v2674_v17 = vld [vmem:[#allocation8 + $0x8] sm:$0xff]   ;;  %v2675_v18 = vld [vmem:[#allocation8 + $0x50] sm:$0xff]  }
  0xbf   :  { %1461 = vmatpush1.bf16.msra.mxu1 %v2584_v19  ;;  %1421 = vmatprep.subr.bf16.mxu0 %v2589_v20  ;;  %v2676_v19 = vld [vmem:[#allocation8 + $0x10] sm:$0xff]   ;;  %v2677_v20 = vld [vmem:[#allocation8 + $0x58] sm:$0xff]  }
  0xc0   :  { %1462 = vmatprep.subr.bf16.mxu1 %v2592_v21  ;;  %v2678_v21 = vld [vmem:[#allocation8 + $0x18] sm:$0xff]  }
  0xc2   :  { %1422 = vmatpush1.bf16.msra.mxu0 %v2587_v22  ;;  %v2679_v22 = vld [vmem:[#allocation8 + $0x60] sm:$0xff]  }
  0xc3   :  { %1463 = vmatpush1.bf16.msra.mxu1 %v2590_v23  ;;  %1423 = vmatprep.subr.bf16.mxu0 %v2595_v24  ;;  %v2680_v23 = vld [vmem:[#allocation8 + $0x20] sm:$0xff]   ;;  %v2681_v24 = vld [vmem:[#allocation8 + $0x68] sm:$0xff]  }
  0xc4   :  { %1464 = vmatprep.subr.bf16.mxu1 %v2598_v25  ;;  %v2684_v25 = vld [vmem:[#allocation8 + $0x30] sm:$0xff]  }
  0xc6   :  { %1424 = vmatpush1.bf16.msra.mxu0 %v2593_v26  ;;  %v2685_v26 = vld [vmem:[#allocation8 + $0x78] sm:$0xff]  }
  0xc7   :  { %1465 = vmatpush1.bf16.msra.mxu1 %v2596_v6  ;;  %1425 = vmatprep.subr.bf16.mxu0 %v2601_v27  ;;  %v2686_v6 = vld [vmem:[#allocation8 + $0x38] sm:$0xff]   ;;  %v2687_v27 = vld [vmem:[#allocation8 + $0xc0] sm:$0xff]  }
  0xc8   :  { %1466 = vmatprep.subr.bf16.mxu1 %v2604_v28  ;;  %v2688_v28 = vld [vmem:[#allocation8 + $0x80] sm:$0xff]  }
  0xca   :  { %1426 = vmatpush1.bf16.msra.mxu0 %v2599_v29  ;;  %v2689_v29 = vld [vmem:[#allocation8 + $0xc8] sm:$0xff]  }
  0xcb   :  { %1467 = vmatpush1.bf16.msra.mxu1 %v2602_v30  ;;  %1427 = vmatprep.subr.bf16.mxu0 %v2607_v31  ;;  %v2690_v30 = vld [vmem:[#allocation8 + $0x88] sm:$0xff]   ;;  %v2691_v31 = vld [vmem:[#allocation8 + $0xd0] sm:$0xff]  }
  0xcc   :  { %1468 = vmatprep.subr.bf16.mxu1 %v2610_v51  ;;  %v2692_v51 = vld [vmem:[#allocation8 + $0x90] sm:$0xff]  }
  0xce   :  { %1428 = vmatpush1.bf16.msra.mxu0 %v2605_v32  ;;  %v2693_v32 = vld [vmem:[#allocation8 + $0xd8] sm:$0xff]  }
  0xcf   :  { %1469 = vmatpush1.bf16.msra.mxu1 %v2608_v33  ;;  %1429 = vmatprep.subr.bf16.mxu0 %v2613_v34  ;;  %v2694_v33 = vld [vmem:[#allocation8 + $0x98] sm:$0xff]   ;;  %v2695_v34 = vld [vmem:[#allocation8 + $0xe0] sm:$0xff]  }
  0xd0   :  { %1470 = vmatprep.subr.bf16.mxu1 %v2616_v35  ;;  %v2696_v35 = vld [vmem:[#allocation8 + $0xa0] sm:$0xff]  }
  0xd2   :  { %1430 = vmatpush1.bf16.msra.mxu0 %v2611_v36  ;;  %v2697_v36 = vld [vmem:[#allocation8 + $0xe8] sm:$0xff]  }
  0xd3   :  { %1471 = vmatpush1.bf16.msra.mxu1 %v2614_v37  ;;  %1431 = vmatprep.subr.bf16.mxu0 %v2619_v38 }
  0xd4   :  { %1472 = vmatprep.subr.bf16.mxu1 %v2622_v39  ;;  %v2698_v39 = vld [vmem:[#allocation8 + $0xa8] sm:$0xff]  }
  0xd6   :  { %1432 = vmatpush1.bf16.msra.mxu0 %v2617_v40 }
  0xd7   :  { %1473 = vmatpush1.bf16.msra.mxu1 %v2620_v41  ;;  %1433 = vmatprep.subr.bf16.mxu0 %v2625_v42 }
  0xd8   :  { %1474 = vmatprep.subr.bf16.mxu1 %v2628_v43 }
  0xda   :  { %1434 = vmatpush1.bf16.msra.mxu0 %v2623_v44 }
  0xdb   :  { %1475 = vmatpush1.bf16.msra.mxu1 %v2626_v45  ;;  %1435 = vmatprep.subr.bf16.mxu0 %v2631_v46 }
  0xdc   :  { %1476 = vmatprep.subr.bf16.mxu1 %v2634_v47 }
  0xde   :  { %1436 = vmatpush1.bf16.msra.mxu0 %v2629_v48  ;;  %v2699_v48 = vld [vmem:[#allocation8 + $0xf0] sm:$0xff]  }
  0xdf   :  { %1477 = vmatpush1.bf16.msra.mxu1 %v2632_v49  ;;  %1437 = vmatprep.subr.bf16.mxu0 %v2637_v50  ;;  %v2700_v49 = vld [vmem:[#allocation8 + $0xb0] sm:$0xff]   ;;  %v2701_v50 = vld [vmem:[#allocation8 + $0xf8] sm:$0xff]  }
  0xe0   :  { %1478 = vmatprep.subr.bf16.mxu1 %v2640_v52  ;;  %v2702_v52 = vld [vmem:[#allocation8 + $0xb8] sm:$0xff]  }
  0xe2   :  { %1438 = vmatpush1.bf16.msra.mxu0 %v2635_v53  ;;  %v1516_v53 = vlaneseq }
  0xe3   :  { %1479 = vmatpush1.bf16.msra.mxu1 %v2638_v54  ;;  %1439 = vmatprep.subr.bf16.mxu0 %v2643_v55 }
  0xe4   :  { %1480 = vmatprep.subr.bf16.mxu1 %v2646_v56  ;;  %v2962_v54 = vshrl.u32 %v1516_v53, 7  ;;  %v1514_v56 = vld [vmem:[%s3068_s2] sm:$0xf]  ;;  %s2850_s2 = smov [#allocation9]  }
  0xe5   :  { %s2052_s17 = sshll.u32 %s2850_s2, 4  ;;  %s2053_s17 = int_to_ptr.vmem [resolvable:$true] %s2052_s17 }
  0xe6   :  { %1440 = vmatpush1.bf16.msra.mxu0 %v2641_v57  ;;  %v2965_v55 = vsub.s32 0, %v2962_v54  ;;  %v1522_v57 = vsub.s32 1, %v2962_v54  ;;  %s2769_s18 = scalar_lea.vmem %s2053_s17, 512  ;;  %p2774_p11 = scmp.lt.s32.totalorder %s2053_s17, %s2053_s17 }
  0xe7   :  { %1481 = vmatpush1.bf16.msra.mxu1 %v2644_v58  ;;  %1441 = vmatprep.subr.bf16.mxu0 %v2649_v59  ;;  %p2770_p10 = scmp.ne.s32.totalorder %s2053_s17, %s2769_s18  ;;  %p2775_p12 = scmp.lt.s32.totalorder %s2769_s18, %s2769_s18 }
  0xe8   :  { %1482 = vmatprep.subr.bf16.mxu1 %v2652_v60  ;;  %v1519_v58 = vrot.slane %v1514_v56, %v2965_v55 }
  0xe9   :  { %p2776_p13 = por %p2775_p12, %p2774_p11 }
  0xea   :  { %1442 = vmatpush1.bf16.msra.mxu0 %v2647_v61  ;;  %v1523_v61 = vrot.slane %v1514_v56, %v1522_v57 }
  0xeb   :  { %1483 = vmatpush1.bf16.msra.mxu1 %v2650_v62  ;;  %1443 = vmatprep.subr.bf16.mxu0 %v2655_v63  ;;  %p2777_p0 = pnand %p2776_p13, %p2770_p10 }
  0xec   :  { %1484 = vmatprep.subr.bf16.mxu1 %v2658_v0 }
  0xee   :  { %1444 = vmatpush1.bf16.msra.mxu0 %v2653_v1 }
  0xef   :  { %1485 = vmatpush1.bf16.msra.mxu1 %v2656_v2  ;;  %1445 = vmatprep.subr.bf16.mxu0 %v2661_v3 }
  0xf0   :  { %1486 = vmatprep.subr.bf16.mxu1 %v2664_v4 }
  0xf2   :  { %1446 = vmatpush1.bf16.msra.mxu0 %v2659_v5 }
  0xf3   :  { %1487 = vmatpush1.bf16.msra.mxu1 %v2662_v8  ;;  %1447 = vmatprep.subr.bf16.mxu0 %v2667_v9 }
  0xf4   :  { %1488 = vmatprep.subr.bf16.mxu1 %v2670_v10 }
  0xf6   :  { %1448 = vmatpush1.bf16.msra.mxu0 %v2665_v11 }
  0xf7   :  { %1489 = vmatpush1.bf16.msra.mxu1 %v2668_v12  ;;  %2320 = vmatprep.subr.bf16.mxu0 %v2671_v14 }
  0xf8   :  { %2342 = vmatprep.subr.bf16.mxu1 %v2687_v27 }
  0xf9   :  { %1450 = vmatmul.mubr.bf16.vlgmr.msra.gmra.mrb[8].mxu0 %v2940_v7  ;;  %v2682_v7 = vld [vmem:[#allocation8 + $0x28] sm:$0xff]  }
  0xfa   :  { %1491 = vmatmul.mubr.bf16.vlgmr.msra.gmra.mrb[8].mxu1 %v2954_v13  ;;  %2321 = vmatpush3.bf16.msra.mxu0 %v2672_v15  ;;  %v2683_v13 = vld [vmem:[#allocation8 + $0x70] sm:$0xff]   ;;  %v1526_v15 = vsub.s32 2, %v2962_v54 }
  0xfb   :  { %2322 = vmatprep.subr.bf16.mxu0 %v2673_v16  ;;  %2343 = vmatpush3.bf16.msra.mxu1 %v2688_v28  ;;  %v1530_v16 = vsub.s32 3, %v2962_v54 }
  0xfc   :  { %2344 = vmatprep.subr.bf16.mxu1 %v2689_v29 }
  0xfe   :  { %2323 = vmatpush3.bf16.msra.mxu0 %v2674_v17 }
  0xff   :  { %2324 = vmatprep.subr.bf16.mxu0 %v2675_v18  ;;  %2345 = vmatpush3.bf16.msra.mxu1 %v2690_v30 }
 0x100   :  { %2346 = vmatprep.subr.bf16.mxu1 %v2691_v31 }
 0x102   :  { %2325 = vmatpush3.bf16.msra.mxu0 %v2676_v19 }
 0x103   :  { %2326 = vmatprep.subr.bf16.mxu0 %v2677_v20  ;;  %2347 = vmatpush3.bf16.msra.mxu1 %v2692_v51  ;;  %v1527_v20 = vrot.slane %v1514_v56, %v1526_v15 }
 0x104   :  { %2348 = vmatprep.subr.bf16.mxu1 %v2693_v32 }
 0x106   :  { %2327 = vmatpush3.bf16.msra.mxu0 %v2678_v21 }
 0x107   :  { %2328 = vmatprep.subr.bf16.mxu0 %v2679_v22  ;;  %2349 = vmatpush3.bf16.msra.mxu1 %v2694_v33 }
 0x108   :  { %2350 = vmatprep.subr.bf16.mxu1 %v2695_v34 }
 0x10a   :  { %2329 = vmatpush3.bf16.msra.mxu0 %v2680_v23 }
 0x10b   :  { %2330 = vmatprep.subr.bf16.mxu0 %v2681_v24  ;;  %2351 = vmatpush3.bf16.msra.mxu1 %v2696_v35  ;;  %v1531_v24 = vrot.slane %v1514_v56, %v1530_v16 }
 0x10c   :  { %2352 = vmatprep.subr.bf16.mxu1 %v2697_v36 }
 0x10e   :  { %2331 = vmatpush3.bf16.msra.mxu0 %v2682_v7 }
 0x10f   :  { %2332 = vmatprep.subr.bf16.mxu0 %v2683_v13  ;;  %2353 = vmatpush3.bf16.msra.mxu1 %v2698_v39 }
 0x110   :  { %2354 = vmatprep.subr.bf16.mxu1 %v2699_v48 }
 0x112   :  { %2333 = vmatpush3.bf16.msra.mxu0 %v2684_v25 }
 0x113   :  { %2334 = vmatprep.subr.bf16.mxu0 %v2685_v26  ;;  %2355 = vmatpush3.bf16.msra.mxu1 %v2700_v49 }
 0x114   :  { %2356 = vmatprep.subr.bf16.mxu1 %v2701_v50 }
 0x116   :  { %2335 = vmatpush3.bf16.msra.mxu0 %v2686_v6 }
 0x117   :  { %2357 = vmatpush3.bf16.msra.mxu1 %v2702_v52 }
 0x14c   :  { %v1287_v37 = vpop.f32.mrb[0].mxu0 }
 0x14d   :  { %v1328_v38 = vpop.f32.mrb[0].mxu1  ;;  %v1289_v41 = vpop.f32.mrb[1].mxu0 }
 0x14e   :  { %v1329_v40 = vadd.f32 %v1328_v38, %v1287_v37  ;;  %v1330_v42 = vpop.f32.mrb[1].mxu1  ;;  %v1291_v44 = vpop.f32.mrb[2].mxu0 }
 0x14f   :  { %v1331_v43 = vadd.f32 %v1330_v42, %v1289_v41  ;;  %v1332_v45 = vpop.f32.mrb[2].mxu1  ;;  %v1292_v46 = vpop.f32.mrb[3].mxu0 }
 0x150   :  { %v1333_v47 = vpop.f32.mrb[3].mxu1 }
 0x18c   :  { %v1369_v59 = vpop.f32.mrb[4].mxu0 }
 0x18d   :  { %v1410_v60 = vpop.f32.mrb[4].mxu1  ;;  %v1370_v62 = vadd.f32 %v1369_v59, %v1329_v40  ;;  %v1371_v63 = vpop.f32.mrb[5].mxu0 }
 0x18e   :  { %v1412_v0 = vpop.f32.mrb[5].mxu1  ;;  %v1372_v1 = vadd.f32 %v1371_v63, %v1331_v43  ;;  %v1373_v2 = vpop.f32.mrb[6].mxu0 }
 0x18f   :  { %v1414_v3 = vpop.f32.mrb[6].mxu1  ;;  %v1536_v4 = vadd.f32 %v1519_v58, %v1370_v62  ;;  %v1374_v5 = vpop.f32.mrb[7].mxu0 }
 0x190   :  { %v1415_v8 = vpop.f32.mrb[7].mxu1  ;;  %v1537_v9 = vadd.f32 %v1523_v61, %v1372_v1 }
 0x191   :  { %v1540_v10 = vmax.f32 %v1536_v4, 0.0 }
 0x192   :  { %v1541_v11 = vmax.f32 %v1537_v9, 0.0 }
 0x193   :  { %1544 = vst [vmem:[#allocation9] sm:$0xff] %v1540_v10  ;;  %v1548_v14 = vpack.c.bf16 %v1540_v10, %v1540_v10 }
 0x194   :  { %1545 = vst [vmem:[#allocation9 + $0x8] sm:$0xff] %v1541_v11  ;;  %v1549_v12 = vpack.c.bf16 %v1541_v11, %v1541_v11 }
 0x196   :  { %1847 = vmatprep.mubr.bf16.mxu0 %v1549_v12 }
 0x197   :  { %1848 = vmatmul.mubr.bf16.vlgmr.msra.gmra.mrb[12].mxu0 %v1548_v14 }
 0x1cc   :  { %v1451_v17 = vpop.f32.mrb[8].mxu0 }
 0x1cd   :  { %v1492_v18 = vpop.f32.mrb[8].mxu1  ;;  %v1452_v19 = vadd.f32 %v1451_v17, %v1410_v60  ;;  %v1453_v21 = vpop.f32.mrb[9].mxu0 }
 0x1ce   :  { %v1494_v22 = vpop.f32.mrb[9].mxu1  ;;  %v1454_v23 = vadd.f32 %v1453_v21, %v1412_v0  ;;  %v1455_v7 = vpop.f32.mrb[10].mxu0 }
 0x1cf   :  { %v1496_v13 = vpop.f32.mrb[10].mxu1  ;;  %v1493_v25 = vadd.f32 %v1492_v18, %v1452_v19  ;;  %v1456_v26 = vpop.f32.mrb[11].mxu0 }
 0x1d0   :  { %v1497_v6 = vpop.f32.mrb[11].mxu1  ;;  %v1495_v27 = vadd.f32 %v1494_v22, %v1454_v23 }
 0x1d1   :  { %v1538_v28 = vadd.f32 %v1527_v20, %v1493_v25 }
 0x1d2   :  { %v1539_v29 = vadd.f32 %v1531_v24, %v1495_v27 }
 0x1d3   :  { %v1542_v30 = vmax.f32 %v1538_v28, 0.0 }
 0x1d4   :  { %v1543_v31 = vmax.f32 %v1539_v29, 0.0 }
 0x1d5   :  { %1546 = vst [vmem:[#allocation9 + $0x10] sm:$0xff] %v1542_v30  ;;  %v1550_v32 = vpack.c.bf16 %v1542_v30, %v1542_v30 }
 0x1d6   :  { %1547 = vst [vmem:[#allocation9 + $0x18] sm:$0xff] %v1543_v31  ;;  %v1551_v51 = vpack.c.bf16 %v1543_v31, %v1543_v31 }
 0x1d8   :  { %1887 = vmatprep.mubr.bf16.mxu1 %v1551_v51 }
 0x1d9   :  { %1888 = vmatmul.mubr.bf16.vlgmr.msra.gmra.mrb[12].mxu1 %v1550_v32 }
 0x1da   :  { %2780 = shalt.err (!%p2777_p0)
}
 0x1db   :  { %s2781_s21 = scalar_lea.hbm %s3071_s5, 512 }
 0x1dc   :  { %p2782_p1 = scmp.ne.s32.totalorder %s3071_s5, %s2781_s21  ;;  %p2785_p2 = scmp.lt.u32.totalorder %s2781_s21, %s3071_s5 }
 0x1de   :  { %p2787_p3 = pnand %p2785_p2, %p2782_p1 }
 0x1e0   :  { %2790 = shalt.err (!%p2787_p3)
}
 0x1e1   :  { %2055 = dma.vmem_to_hbm [thread:$0]  %s2053_s17, 512, %s3071_s5, [#allocation5]   ;;  %v2851_v38 = vmov 1966171168   ;;  %v2287_v41 = vld [vmem:[%s3070_s4] ss:$0 sm:$0xff] }
 0x1e2   :  { %v1899_v39 = vunpack.c.l.s4 %v2851_v38  ;;  %s2852_s29 = smov [#allocation10]  }
 0x1e3   :  { %s2062_s30 = sshll.u32 %s2852_s29, 4  ;;  %s2063_s30 = int_to_ptr.vmem [resolvable:$true] %s2062_s30 }
 0x1e4   :  { %v1900_v40 = vunpack.c.0.s8 %v1899_v39  ;;  %s2791_s4 = scalar_lea.vmem %s2063_s30, 128  ;;  %p2796_p5 = scmp.lt.s32.totalorder %s2063_s30, %s2063_s30 }
 0x1e5   :  { %p2792_p4 = scmp.ne.s32.totalorder %s2063_s30, %s2791_s4  ;;  %p2797_p6 = scmp.lt.s32.totalorder %s2791_s4, %s2791_s4 }
 0x1e6   :  { %v1903_v47 = vsub.s32 %v1900_v40, %v2962_v54 }
 0x1e7   :  { %p2798_p7 = por %p2797_p6, %p2796_p5 }
 0x1e9   :  { %p2799_p8 = pnand %p2798_p7, %p2792_p4 }
 0x26a   :  { %v2336_v33 = vpop.f32.mrb[12].mxu0 }
 0x26b   :  { %v2337_v34 = vpop.f32.mrb[13].mxu0 }
 0x26c   :  { %v2338_v35 = vadd.f32 %v2337_v34, %v2336_v33  ;;  %v2339_v36 = vpop.f32.mrb[14].mxu0 }
 0x26d   :  { %v2340_v37 = vpop.f32.mrb[15].mxu0 }
 0x26e   :  { %v1850_v44 = vadd.f32 %v2338_v35, %v2287_v41 }
 0x2ac   :  { %v2358_v42 = vpop.f32.mrb[12].mxu1 }
 0x2ad   :  { %v2359_v43 = vpop.f32.mrb[13].mxu1 }
 0x2ae   :  { %v2360_v45 = vadd.f32 %v2359_v43, %v2358_v42  ;;  %v2361_v46 = vpop.f32.mrb[14].mxu1 }
 0x2af   :  { %v2362_v48 = vpop.f32.mrb[15].mxu1 }
 0x2b0   :  { %v2990_v49 = vadd.f32 %v2360_v45, %v1850_v44 }
 0x2b2   :  { %1895 = vst [vmem:[#allocation10] sm:$0xff] %v2990_v49  ;;  %v1897_v50 = vcombine.high %v2990_v49, %v2990_v49  ;;  %v1904_v52 = vrot.slane %v2990_v49, %v1903_v47 }
 0x2b3   :  { %2802 = shalt.err (!%p2799_p8)
}
 0x2b4   :  { %s2803_s9 = scalar_lea.hbm %s3072_s6, 128 }
 0x2b5   :  { %p2804_p9 = scmp.ne.s32.totalorder %s3072_s6, %s2803_s9  ;;  %p2807_p10 = scmp.lt.u32.totalorder %s2803_s9, %s3072_s6 }
 0x2b7   :  { %p2809_p11 = pnand %p2807_p10, %p2804_p9 }
 0x2b9   :  { %2812 = shalt.err (!%p2809_p11)
}
 0x2ba   :  { %2065 = dma.vmem_to_hbm [thread:$0]  %s2063_s30, 128, %s3072_s6, [#allocation11]   ;;  %v1911_v53 = vrot.slane %v1897_v50, %v1903_v47  ;;  %v1912_v56 = vcombine.high %v1904_v52, %v1904_v52  ;;  %v1920_v57 = vrot.slane %v1904_v52, %v1903_v47  ;;  %vm2004_vm0 = vcmp.gt.s32.totalorder %v2962_v54, 0 }
 0x2bb   :  { %vm2005_vm1 = vcmp.gt.s32.totalorder %v2962_v54, 1  ;;  %vm2006_vm7 = vcmp.gt.s32.totalorder %v2962_v54, 2  ;;  %vm2007_vm8 = vcmp.gt.s32.totalorder %v2962_v54, 3  ;;  %v3074_v11 = vmov 0  ;;  %s2854_s6 = smov [#allocation12]  }
 0x2bc   :  { %v1913_v58 = vcombine.high %v1911_v53, %v1911_v53  ;;  %v1927_v59 = vrot.slane %v1911_v53, %v1903_v47  ;;  %v1934_v60 = vrot.slane %v1912_v56, %v1903_v47  ;;  %v1942_v61 = vcombine.high %v1920_v57, %v1920_v57  ;;  %s2072_s15 = sshll.u32 %s2854_s6, 4  ;;  %s2073_s15 = int_to_ptr.vmem [resolvable:$true] %s2072_s15 }
 0x2bd   :  { %v1949_v62 = vrot.slane %v1920_v57, %v2965_v55  ;;  %v3076_v14 = vmov 0  ;;  %v2855_v6 = vmov -1.0   ;;  %s2813_s3 = scalar_lea.vmem %s2073_s15, 128  ;;  %p2818_p13 = scmp.lt.s32.totalorder %s2073_s15, %s2073_s15 }
 0x2be   :  { %v1941_v63 = vrot.slane %v1913_v58, %v1903_v47  ;;  %v1943_v0 = vcombine.high %v1927_v59, %v1927_v59  ;;  %v1944_v1 = vcombine.high %v1934_v60, %v1934_v60  ;;  %v1953_v2 = vrot.slane %v1934_v60, %v2965_v55  ;;  %p2814_p12 = scmp.ne.s32.totalorder %s2073_s15, %s2813_s3  ;;  %p2819_p0 = scmp.lt.s32.totalorder %s2813_s3, %s2813_s3 }
 0x2bf   :  { %v1957_v3 = vrot.slane %v1942_v61, %v2965_v55  ;;  %v1965_v4 = vrot.slane %v1927_v59, %v2965_v55  ;;  %vm1988_vm2 = vcmp.gt.f32.partialorder %v1949_v62, %v2990_v49  ;;  %vm1996_vm3 = vcmp.eq.f32.partialorder %v1949_v62, %v2990_v49 }
 0x2c0   :  { %v1945_v5 = vcombine.high %v1941_v63, %v1941_v63  ;;  %v1961_v8 = vrot.slane %v1944_v1, %v2965_v55  ;;  %v1969_v9 = vrot.slane %v1941_v63, %v2965_v55  ;;  %vm2012_vm4 = vmand %vm1996_vm3, %vm2004_vm0  ;;  %v1973_v10 = vrot.slane %v1943_v0, %v2965_v55  ;;  %p2820_p1 = por %p2819_p0, %p2818_p13 }
 0x2c1   :  { %vm1989_vm5 = vcmp.gt.f32.partialorder %v1953_v2, %v2990_v49  ;;  %vm1997_vm6 = vcmp.eq.f32.partialorder %v1953_v2, %v2990_v49  ;;  %vm3026_vm11 = vmor %vm1988_vm2, %vm2012_vm4  ;;  %vm1998_vm12 = vcmp.eq.f32.partialorder %v1957_v3, %v2990_v49  ;;  %vm2000_vm14 = vcmp.eq.f32.partialorder %v1965_v4, %v2990_v49 }
 0x2c2   :  { %vm2013_vm10 = vmand %vm1997_vm6, %vm2005_vm1  ;;  %v3075_v11 = vsel %vm3026_vm11, 4294967295, %v3074_v11  ;;  %v1977_v12 = vrot.slane %v1945_v5, %v2965_v55  ;;  %vm1999_vm13 = vcmp.eq.f32.partialorder %v1961_v8, %v2990_v49  ;;  %vm2001_vm0 = vcmp.eq.f32.partialorder %v1969_v9, %v2990_v49  ;;  %p2821_p2 = pnand %p2820_p1, %p2814_p12 }
 0x2c3   :  { %vm3034_vm15 = vmor %vm1989_vm5, %vm2013_vm10  ;;  %vm2009_vm1 = vcmp.gt.s32.totalorder %v2962_v54, 5  ;;  %vm2002_vm3 = vcmp.eq.f32.partialorder %v1973_v10, %v2990_v49  ;;  %vm2010_vm4 = vcmp.gt.s32.totalorder %v2962_v54, 6  ;;  %vm1990_vm9 = vcmp.gt.f32.partialorder %v1957_v3, %v2990_v49 }
 0x2c4   :  { %v3077_v14 = vsel %vm3034_vm15, 4294967295, %v3076_v14  ;;  %vm2014_vm2 = vmand %vm1998_vm12, %vm2006_vm7  ;;  %vm3078_vm11 = vcmp.gt.s32.totalorder %v2962_v54, 4  ;;  %vm1991_vm10 = vcmp.gt.f32.partialorder %v1961_v8, %v2990_v49  ;;  %vm1995_vm15 = vcmp.gt.f32.partialorder %v1977_v12, %v2990_v49 }
 0x2c5   :  { %vm2015_vm6 = vmand %vm1999_vm13, %vm2007_vm8  ;;  %vm1992_vm12 = vcmp.gt.f32.partialorder %v1965_v4, %v2990_v49  ;;  %vm1993_vm13 = vcmp.gt.f32.partialorder %v1969_v9, %v2990_v49  ;;  %v2853_v55 = vmov 0  }
 0x2c6   :  { %vm2016_vm5 = vmand %vm2000_vm14, %vm3078_vm11  ;;  %vm1994_vm14 = vcmp.gt.f32.partialorder %v1973_v10, %v2990_v49  ;;  %v2035_v15 = vsel %vm1995_vm15, 1, %v2853_v55 }
 0x2c7   :  { %vm2017_vm7 = vmand %vm2001_vm0, %vm2009_vm1 }
 0x2c8   :  { %vm2018_vm8 = vmand %vm2002_vm3, %vm2010_vm4 }
 0x2c9   :  { %vm2022_vm11 = vmor %vm1990_vm9, %vm2014_vm2  ;;  %vm3079_vm2 = vnez %v3075_v11  ;;  %vm3080_vm9 = vnez %v3077_v14 }
 0x2ca   :  { %vm2023_vm0 = vmor %vm1991_vm10, %vm2015_vm6  ;;  %v2028_v17 = vsel %vm3079_vm2, 1, %v2853_v55  ;;  %v2029_v18 = vsel %vm3080_vm9, 1, %v2853_v55  ;;  %v2030_v21 = vsel %vm2022_vm11, 1, %v2853_v55 }
 0x2cb   :  { %vm2024_vm1 = vmor %vm1992_vm12, %vm2016_vm5  ;;  %v2031_v16 = vsel %vm2023_vm0, 1, %v2853_v55 }
 0x2cc   :  { %vm2025_vm3 = vmor %vm1993_vm13, %vm2017_vm7  ;;  %v2032_v54 = vsel %vm2024_vm1, 1, %v2853_v55  ;;  %v2039_v20 = vadd.s32 %v2035_v15, %v2031_v16 }
 0x2cd   :  { %vm2026_vm4 = vmor %vm1994_vm14, %vm2018_vm8  ;;  %v2033_v19 = vsel %vm2025_vm3, 1, %v2853_v55  ;;  %v2036_v23 = vadd.s32 %v2032_v54, %v2028_v17 }
 0x2ce   :  { %v2034_v22 = vsel %vm2026_vm4, 1, %v2853_v55  ;;  %v2037_v24 = vadd.s32 %v2033_v19, %v2029_v18 }
 0x2cf   :  { %v2038_v7 = vadd.s32 %v2034_v22, %v2030_v21 }
 0x2d0   :  { %v2040_v13 = vadd.s32 %v2037_v24, %v2036_v23 }
 0x2d1   :  { %v2041_v25 = vadd.s32 %v2039_v20, %v2038_v7 }
 0x2d3   :  { %v2042_v26 = vadd.s32 %v2041_v25, %v2040_v13 }
 0x2d5   :  { %vm2043_vm15 = vcmp.lt.s32.totalorder %v2042_v26, 4 }
 0x2d6   :  { %v2044_v27 = vsel %vm2043_vm15, 1.0, %v2855_v6 }
 0x2d7   :  { %2045 = vst [vmem:[#allocation12] sm:$0xff] %v2044_v27 }
 0x2d8   :  { %2824 = shalt.err (!%p2821_p2)
}
 0x2d9   :  { %s2825_s17 = scalar_lea.hbm %s3073_s7, 128 }
 0x2da   :  { %p2826_p3 = scmp.ne.s32.totalorder %s3073_s7, %s2825_s17  ;;  %p2829_p4 = scmp.lt.u32.totalorder %s2825_s17, %s3073_s7 }
 0x2dc   :  { %p2831_p5 = pnand %p2829_p4, %p2826_p3 }
 0x2de   :  { %2834 = shalt.err (!%p2831_p5)
}
 0x2df   :  { %2075 = dma.vmem_to_hbm [thread:$0]  %s2073_s15, 128, %s3073_s7, [#allocation11]  }
 0x2e0   :  { %2839 = dma.done.wait [#allocation5], 512  }
 0x2e1   :  { %2840 = vsyncadd [#allocation5], 4294966784 }
 0x2e2   :  { %2841 = dma.done.wait [#allocation11], 256  }
 0x2e3   :  { %2842 = vsyncadd [#allocation11], 4294967040 }
 0x2e4   :  { %2085 = vsyncpa [#allocation4], 1 }
 0x2e5   :  { %2086 = vsyncpa [#allocation7], 1 }
 0x2e6   :  { %2087 = vsyncpa [#allocation5], 1 }
 0x2e7   :  { %2088 = vsyncpa [#allocation11], 1 }

</bundles_post_ra>
